<compile_context>
chip_gen: v7x
topology: tpu7x:2x2x1
jax: 0.10.0
libtpu: 0.0.40
codegen_flags: <defaults>
</compile_context>

<pallas_src>
import functools

import jax
import jax.numpy as jnp
from jax.experimental import pallas as pl
from jax.experimental.pallas import tpu as pltpu


def _label_smoothing_kernel(x_ref, tgt_ref, out_ref, *,
                            padding_idx, confidence, smoothing, inv_v):
    # Load logits in native dtype, compute in float32 (matches dtype=torch.float32).
    x = x_ref[...].astype(jnp.float32)                         # (TM, V)
    tgt = tgt_ref[...]                                         # (TM, 1) int32

    # Row-wise log-softmax statistics (no full logprobs matrix materialized).
    m = jnp.max(x, axis=-1, keepdims=True)                     # (TM, 1)
    lse = jnp.log(jnp.sum(jnp.exp(x - m), axis=-1, keepdims=True))  # (TM, 1)

    # x[i, tgt[i]] via masked select (no one-hot float multiply).
    col = jax.lax.broadcasted_iota(jnp.int32, x.shape, 1)
    g = jnp.sum(jnp.where(col == tgt, x, 0.0), axis=-1, keepdims=True)   # (TM, 1)
    s = jnp.sum(x, axis=-1, keepdims=True)                               # (TM, 1)

    mlse = m + lse
    nll_loss = mlse - g              # -logprobs[i, tgt[i]]
    smooth_loss = mlse - s * inv_v   # -mean(logprobs[i, :])

    non_pad = (tgt != padding_idx).astype(jnp.float32)          # (TM, 1)
    per_row = (confidence * nll_loss + smoothing * smooth_loss) * non_pad

    out_ref[...] = per_row           # (TM, 1) float32


def _vmem_capacity_bytes():
    try:
        return int(pltpu.get_tpu_info().vmem_capacity_bytes)
    except Exception:
        return 64 << 20   # conservative (v7x-sized) fallback


def _choose_tm(n_rows, v, itemsize, vmem_cap):
    """Pick a row tile: big enough to stream HBM efficiently, small enough that
    the double-buffered (tm, V) input block fits comfortably in VMEM."""
    sub = 16 if itemsize < 4 else 8                 # bf16 packs 16 sublanes
    budget = max(int(vmem_cap * 0.4), 8 << 20)      # for 2x (tm, V) input buffers
    tm_cap = max(sub, budget // (2 * v * itemsize))
    tm_target = max(sub, (8 << 20) // (v * itemsize))   # ~8 MiB per input block
    tm = min(tm_cap, tm_target)
    n_round = ((n_rows + sub - 1) // sub) * sub
    tm = min(tm, n_round)                           # never exceed total rows
    tm = max(sub, (tm // sub) * sub)
    return tm


def label_smoothing_loss(output, target, padding_idx, smoothing=0.0):
    """output: (T, B, V) float (f32/bf16); target: (T*B,) int.  Returns scalar f32."""
    T, B, V = output.shape
    N = T * B
    confidence = 1.0 - smoothing

    x = output.reshape(N, V)                        # keep native dtype (bf16 OK)
    tgt = target.reshape(N, 1).astype(jnp.int32)

    itemsize = jnp.dtype(x.dtype).itemsize
    vmem_cap = _vmem_capacity_bytes()
    tm = _choose_tm(N, V, itemsize, vmem_cap)

    # Pad rows so the grid divides evenly; padded rows get padding_idx targets,
    # which the non-pad mask zeroes out.
    n_tiles = -(-N // tm)
    n_pad = n_tiles * tm
    if n_pad != N:
        x = jnp.concatenate(
            [x, jnp.zeros((n_pad - N, V), dtype=x.dtype)], axis=0)
        tgt = jnp.concatenate(
            [tgt, jnp.full((n_pad - N, 1), padding_idx, dtype=jnp.int32)], axis=0)

    # Raise the scoped-VMEM limit to fit the double-buffered tiles (+ slack).
    vmem_needed = 2 * tm * V * itemsize + 2 * tm * 4 + 2 * tm * 4 + (4 << 20)
    vmem_limit = int(min(int(vmem_cap * 0.9), max(vmem_needed, 32 << 20)))

    kernel = functools.partial(
        _label_smoothing_kernel,
        padding_idx=padding_idx,
        confidence=confidence,
        smoothing=smoothing,
        inv_v=1.0 / V,
    )

    per_row = pl.pallas_call(
        kernel,
        out_shape=jax.ShapeDtypeStruct((n_pad, 1), jnp.float32),
        grid_spec=pltpu.PrefetchScalarGridSpec(
            num_scalar_prefetch=0,
            grid=(n_tiles,),
            in_specs=[
                pl.BlockSpec((tm, V), lambda i: (i, 0)),
                pl.BlockSpec((tm, 1), lambda i: (i, 0)),
            ],
            out_specs=pl.BlockSpec((tm, 1), lambda i: (i, 0)),
        ),
        compiler_params=pltpu.CompilerParams(
            dimension_semantics=("parallel",),      # no carried state -> megacore OK
            vmem_limit_bytes=vmem_limit,
        ),
    )(x, tgt)

    # Final reduction + normalization (loss /= output.size(1)) in the wrapper.
    return jnp.sum(per_row) / B


def _reference(output, target, padding_idx, smoothing):
    confidence = 1.0 - smoothing
    T, B, V = output.shape
    x = output.reshape(T * B, V).astype(jnp.float32)
    logprobs = jax.nn.log_softmax(x, axis=-1)
    non_pad = (target != padding_idx).astype(jnp.float32)
    nll = -jnp.take_along_axis(logprobs, target[:, None], axis=-1)[:, 0]
    smooth = -jnp.mean(logprobs, axis=-1)
    loss = (confidence * nll + smoothing * smooth) * non_pad
    return jnp.sum(loss) / B


if __name__ == "__main__":
    # Small shapes: seq=8, batch=2, vocab=32.
    T, B, V = 8, 2, 32
    padding_idx = 0
    smoothing = 0.1

    key = jax.random.PRNGKey(0)
    k1, k2 = jax.random.split(key)
    output = jax.random.normal(k1, (T, B, V), dtype=jnp.float32)
    target = jax.random.randint(k2, (T * B,), 0, V, dtype=jnp.int32)
    # Force a few PAD tokens so the mask path is exercised.
    target = target.at[0].set(padding_idx).at[5].set(padding_idx)

    # float32 logits
    loss = label_smoothing_loss(output, target, padding_idx, smoothing)
    loss = jax.block_until_ready(loss)
    ref = _reference(output, target, padding_idx, smoothing)
    assert jnp.allclose(loss, ref, rtol=1e-5, atol=1e-5), (loss, ref)

    # bfloat16 logits (native-dtype streaming, f32 compute in-kernel)
    output_bf16 = output.astype(jnp.bfloat16)
    loss_bf = jax.block_until_ready(
        label_smoothing_loss(output_bf16, target, padding_idx, smoothing))
    ref_bf = _reference(output_bf16.astype(jnp.float32), target, padding_idx,
                        smoothing)
    assert jnp.allclose(loss_bf, ref_bf, rtol=2e-3, atol=2e-3), (loss_bf, ref_bf)

    print("KERNEL_OK")
</pallas_src>

<mosaic_0001>
module attributes {stable_mosaic.version = 11 : i64} {
  func.func @_label_smoothing_kernel(%arg0: i32, %arg1: memref<16x32xf32, #tpu.memory_space<vmem>>, %arg2: memref<16x1xi32, #tpu.memory_space<vmem>>, %arg3: memref<16x1xf32, #tpu.memory_space<vmem>>) attributes {dimension_semantics = [#tpu.dimension_semantics<parallel>], iteration_bounds = array<i64: 1>, scalar_prefetch = 0 : i64, scratch_operands = 0 : i64, tpu.core_type = #tpu.core_type<tc>, window_params = [{transform_indices = @transform_0, window_bounds = array<i64: 16, 32>}, {transform_indices = @transform_1, window_bounds = array<i64: 16, 1>}, {transform_indices = @transform_2, window_bounds = array<i64: 16, 1>}]} {
    %c0 = arith.constant 0 : index
    %c0_0 = arith.constant 0 : index
    %0 = vector.load %arg1[%c0, %c0_0] : memref<16x32xf32, #tpu.memory_space<vmem>>, vector<16x32xf32>
    %c0_1 = arith.constant 0 : index
    %c0_2 = arith.constant 0 : index
    %1 = vector.load %arg2[%c0_1, %c0_2] : memref<16x1xi32, #tpu.memory_space<vmem>>, vector<16x1xi32>
    %cst = arith.constant dense<0xFF800000> : vector<16xf32>
    %2 = vector.multi_reduction <maximumf>, %0, %cst [1] : vector<16x32xf32> to vector<16xf32>
    %3 = vector.shape_cast %2 : vector<16xf32> to vector<16x1xf32>
    %4 = vector.broadcast %3 : vector<16x1xf32> to vector<16x32xf32>
    %5 = arith.subf %0, %4 : vector<16x32xf32>
    %6 = math.exp %5 : vector<16x32xf32>
    %cst_3 = arith.constant dense<0.000000e+00> : vector<16xf32>
    %7 = vector.multi_reduction <add>, %6, %cst_3 [1] : vector<16x32xf32> to vector<16xf32>
    %8 = vector.shape_cast %7 : vector<16xf32> to vector<16x1xf32>
    %9 = math.log %8 : vector<16x1xf32>
    %10 = tpu.iota {dimensions = array<i32: 1>} : vector<16x32xi32>
    %11 = vector.broadcast %1 : vector<16x1xi32> to vector<16x32xi32>
    %12 = arith.cmpi eq, %10, %11 : vector<16x32xi32>
    %cst_4 = arith.constant 0.000000e+00 : f32
    %13 = vector.broadcast %cst_4 : f32 to vector<16x32xf32>
    %14 = arith.select %12, %0, %13 : vector<16x32xi1>, vector<16x32xf32>
    %cst_5 = arith.constant dense<0.000000e+00> : vector<16xf32>
    %15 = vector.multi_reduction <add>, %14, %cst_5 [1] : vector<16x32xf32> to vector<16xf32>
    %16 = vector.shape_cast %15 : vector<16xf32> to vector<16x1xf32>
    %cst_6 = arith.constant dense<0.000000e+00> : vector<16xf32>
    %17 = vector.multi_reduction <add>, %0, %cst_6 [1] : vector<16x32xf32> to vector<16xf32>
    %18 = vector.shape_cast %17 : vector<16xf32> to vector<16x1xf32>
    %19 = arith.addf %3, %9 : vector<16x1xf32>
    %20 = arith.subf %19, %16 : vector<16x1xf32>
    %cst_7 = arith.constant 3.125000e-02 : f32
    %21 = vector.broadcast %cst_7 : f32 to vector<16x1xf32>
    %22 = arith.mulf %18, %21 : vector<16x1xf32>
    %23 = arith.subf %19, %22 : vector<16x1xf32>
    %c0_i32 = arith.constant 0 : i32
    %24 = vector.broadcast %c0_i32 : i32 to vector<16x1xi32>
    %25 = arith.cmpi ne, %1, %24 : vector<16x1xi32>
    %26 = arith.extui %25 : vector<16x1xi1> to vector<16x1xi32>
    %27 = arith.sitofp %26 : vector<16x1xi32> to vector<16x1xf32>
    %cst_8 = arith.constant 0.899999976 : f32
    %28 = vector.broadcast %cst_8 : f32 to vector<16x1xf32>
    %29 = arith.mulf %28, %20 : vector<16x1xf32>
    %cst_9 = arith.constant 1.000000e-01 : f32
    %30 = vector.broadcast %cst_9 : f32 to vector<16x1xf32>
    %31 = arith.mulf %30, %23 : vector<16x1xf32>
    %32 = arith.addf %29, %31 : vector<16x1xf32>
    %33 = arith.mulf %32, %27 : vector<16x1xf32>
    %c0_10 = arith.constant 0 : index
    %c0_11 = arith.constant 0 : index
    %34 = vector.load %arg3[%c0_10, %c0_11] : memref<16x1xf32, #tpu.memory_space<vmem>>, vector<16x1xf32>
    tpu.vector_store %arg3[%c0_10, %c0_11], %33 {strides = array<i32>} : memref<16x1xf32, #tpu.memory_space<vmem>>, vector<16x1xf32>,
    return
  }
  func.func @transform_0(%arg0: i32) -> (i32, i32) {
    %c0_i32 = arith.constant 0 : i32
    %c0_i32_0 = arith.constant 0 : i32
    return %arg0, %c0_i32 : i32, i32
  }
  func.func @transform_1(%arg0: i32) -> (i32, i32) {
    %c0_i32 = arith.constant 0 : i32
    %c0_i32_0 = arith.constant 0 : i32
    return %arg0, %c0_i32 : i32, i32
  }
  func.func @transform_2(%arg0: i32) -> (i32, i32) {
    %c0_i32 = arith.constant 0 : i32
    %c0_i32_0 = arith.constant 0 : i32
    return %arg0, %c0_i32 : i32, i32
  }
}

</mosaic_0001>

<bundles_post_ra>
// kernel: tpu_custom_call.1
= control target key start
LH: loop header
LB: loop body
LE: loop exit
PB: predicated region body
PF: predicated region fallthrough
CT: control target
= control target key end

     0   :  { %vm15_vm0 = vcmask 261120   ;;  %v105_v2 = vmov 0   ;;  %v38_v13 = vlaneseq  ;;  %v106_v44 = vmov 0.0   ;;  %s152_s0 = inlined_call_operand.vmem [shape: f32[16,32], index: 0, kind: input, shape index: {}]   ;;  %s153_s1 = inlined_call_operand.vmem [shape: s32[16,1], index: 1, kind: input, shape index: {}]   ;;  %s154_s2 = inlined_call_operand.vmem [shape: f32[16,1], index: 2, kind: output, shape index: {}]  }
   0x1   :  { %v11_v0 = vld [vmem:[%s152_s0] sm:$0xff]  ;;  %v12_v1 = vld [vmem:[%s152_s0 + $0x8] sm:$0xff]  ;;  %95 = vset.pattern.permute.xlu1 %v105_v2  ;;  %96 = vset.pattern.permute.xlu0 %v105_v2  ;;  %vm84_vm5 = vcmask 7168  }
   0x2   :  { %v13_v3 = vld [vmem:[%s153_s1] sm:$0xff]  ;;  %v16_v4 = vsel %vm15_vm0, %v11_v0, -inf  ;;  %v135_v5 = vld [vmem:[%s153_s1 + $0x8] sm:$0xff]  ;;  %v19_v6 = vsel %vm15_vm0, %v12_v1, -inf  ;;  %v39_v17 = vand.u32 127, %v38_v13  ;;  %v56_v18 = vsel %vm15_vm0, %v11_v0, 0.0 }
   0x3   :  { %41 = vperm.xlu1 %95, %v13_v3   ;;  %17 = vmax.xlane.f32.xlu0 %v16_v4  ;;  %v59_v22 = vsel %vm15_vm0, %v12_v1, 0.0  ;;  %vm70_vm3 = vcmp.ne.s32.totalorder %v13_v3, 0  ;;  %vm71_vm4 = vcmp.ne.s32.totalorder %v135_v5, 0 }
   0x4   :  { %v91_v45 = vsel %vm70_vm3, 1.0, %v106_v44  ;;  %v92_v53 = vsel %vm71_vm4, 1.0, %v106_v44 }
   0x7   :  { %44 = vperm.xlu1 %95, %v135_v5   ;;  %20 = vmax.xlane.f32.xlu0 %v19_v6 }
  0x82   :  { %v42_v15 = vpop.permute.xlu1 %41 }
  0x83   :  { %vm46_vm1 = vcmp.eq.s32.totalorder %v39_v17, %v42_v15 }
  0x84   :  { %v48_v23 = vsel %vm46_vm1, %v11_v0, 0.0 }
  0x85   :  { %v50_v24 = vsel %vm15_vm0, %v48_v23, 0.0 }
  0x86   :  { %v45_v21 = vpop.permute.xlu1 %44 }
  0x87   :  { %vm47_vm2 = vcmp.eq.s32.totalorder %v39_v17, %v45_v21 }
  0x88   :  { %v49_v25 = vsel %vm47_vm2, %v12_v1, 0.0 }
  0x89   :  { %v53_v26 = vsel %vm15_vm0, %v49_v25, 0.0 }
  0x90   :  { %v18_v7 = vpop.xlane.xlu0 %17 }
  0x91   :  { %v22_v8 = vsub.f32 %v11_v0, %v18_v7 }
  0x93   :  { %v24_v9 = vmul.f32 1.442695, %v22_v8 }
  0x94   :  { %v21_v10 = vpop.xlane.xlu0 %20 }
  0x95   :  { %97 = vpow2.f32 %v24_v9  ;;  %v23_v11 = vsub.f32 %v12_v1, %v21_v10 }
  0x97   :  { %v26_v12 = vmul.f32 1.442695, %v23_v11 }
  0x99   :  { %99 = vpow2.f32 %v26_v12 }
  0x9f   :  { %v98_v14 = vpop.eup %97 }
  0xa0   :  { %v28_v16 = vsel %vm15_vm0, %v98_v14, 0.0 }
  0xa1   :  { %29 = vadd.xlane.f32.xlu0 %v28_v16 }
  0xa3   :  { %v100_v19 = vpop.eup %99 }
  0xa4   :  { %v31_v20 = vsel %vm15_vm0, %v100_v19, 0.0 }
  0xa5   :  { %57 = vadd.xlane.f32.xlu0 %v56_v18  ;;  %32 = vadd.xlane.f32.xlu1 %v31_v20 }
  0xa9   :  { %60 = vadd.xlane.f32.xlu0 %v59_v22 }
  0xad   :  { %51 = vadd.xlane.f32.xlu0 %v50_v24 }
  0xb1   :  { %54 = vadd.xlane.f32.xlu0 %v53_v26 }
 0x12e   :  { %v30_v27 = vpop.xlane.xlu0 %29 }
 0x12f   :  { %101 = vlog2.f32 %v30_v27 }
 0x132   :  { %v33_v28 = vpop.xlane.xlu1 %32  ;;  %v58_v29 = vpop.xlane.xlu0 %57 }
 0x133   :  { %103 = vlog2.f32 %v33_v28  ;;  %v66_v35 = vmul.f32 0.03125, %v58_v29 }
 0x136   :  { %v61_v30 = vpop.xlane.xlu0 %60 }
 0x137   :  { %v67_v42 = vmul.f32 0.03125, %v61_v30 }
 0x139   :  { %v102_v31 = vpop.eup %101 }
 0x13a   :  { %v35_v32 = vmul.f32 0.6931472, %v102_v31  ;;  %v52_v33 = vpop.xlane.xlu0 %51 }
 0x13c   :  { %v62_v34 = vadd.f32 %v35_v32, %v18_v7 }
 0x13d   :  { %v104_v36 = vpop.eup %103 }
 0x13e   :  { %v37_v37 = vmul.f32 0.6931472, %v104_v36  ;;  %v68_v38 = vsub.f32 %v62_v34, %v66_v35  ;;  %v64_v39 = vsub.f32 %v62_v34, %v52_v33  ;;  %v55_v46 = vpop.xlane.xlu0 %54 }
 0x140   :  { %v78_v40 = vmul.f32 0.1, %v68_v38  ;;  %v63_v41 = vadd.f32 %v37_v37, %v21_v10  ;;  %v76_v43 = vmul.f32 0.9, %v64_v39 }
 0x142   :  { %v69_v47 = vsub.f32 %v63_v41, %v67_v42  ;;  %v80_v48 = vadd.f32 %v78_v40, %v76_v43  ;;  %v65_v49 = vsub.f32 %v63_v41, %v55_v46 }
 0x144   :  { %v79_v50 = vmul.f32 0.1, %v69_v47  ;;  %v82_v51 = vmul.f32 %v91_v45, %v80_v48  ;;  %v77_v52 = vmul.f32 0.9, %v65_v49 }
 0x146   :  { %85 = vst.msk [vmem:[%s154_s2] sm:$0xff] %vm84_vm5, %v82_v51  ;;  %v81_v54 = vadd.f32 %v79_v50, %v77_v52 }
 0x148   :  { %v83_v55 = vmul.f32 %v92_v53, %v81_v54 }
 0x14a   :  { %86 = vst.msk [vmem:[%s154_s2 + $0x8] sm:$0xff] %vm84_vm5, %v83_v55 }

</bundles_post_ra>
